<compile_context>
chip_gen: v5e
topology: v5e:2x2
jax: 0.10.0
libtpu: 0.0.40
codegen_flags: <defaults>
</compile_context>

<pallas_src>
import jax
import jax.numpy as jnp
from jax.experimental import pallas as pl
from jax.experimental.pallas import tpu as pltpu


def _round_up(x, m):
    return (x + m - 1) // m * m


def _gelu_tanh_f32(x):
    """tanh-approx GELU (f32).  ~8 VALU ops + 1 EUP tanh per element."""
    c0 = 0.7978845608028654   # sqrt(2/pi)
    c1 = 0.044715
    return 0.5 * x * (1.0 + jnp.tanh(c0 * (x + c1 * x * x * x)))


def _ffn_kernel(x_ref, w1_ref, b1_ref, w2_ref, b2_ref, o_ref):
    # ---- Linear 1: (tm, D) @ (D, H) -> (tm, H).  bf16 MXU operands, f32 acc.
    x_bf16 = x_ref[...].astype(jnp.bfloat16)        # no-op if x already bf16
    h = jnp.dot(x_bf16, w1_ref[...], preferred_element_type=jnp.float32)
    h = h + b1_ref[...]                              # bias in f32

    # ---- GELU (tanh approx); Dropout == identity (eval mode).
    h = _gelu_tanh_f32(h)

    # ---- Linear 2: (tm, H) @ (H, D) -> (tm, D).  bf16 MXU operands, f32 acc.
    y = jnp.dot(h.astype(jnp.bfloat16), w2_ref[...],
                preferred_element_type=jnp.float32)
    y = y + b2_ref[...]

    o_ref[...] = y.astype(o_ref.dtype)


def _vmem_budget_bytes():
    """Scoped-VMEM limit: chip capacity minus headroom, capped at 100 MiB."""
    cap = 64 << 20                                   # conservative default (v7x)
    try:
        info = pltpu.get_tpu_info()
        cap = int(getattr(info, "vmem_capacity_bytes", cap))
    except Exception:
        pass
    return max(min(cap - (8 << 20), 100 << 20), 32 << 20)


def _build_ffn_call(M, D, H, tm, out_dtype, vmem_limit, single_buffer_weights):
    grid_m = pl.cdiv(M, tm)
    # Constant-index (resident) weight/bias blocks: a second pipeline buffer is
    # pure VMEM waste, so request a single buffer when supported.
    wkw = dict(pipeline_mode=pl.Buffered(1)) if single_buffer_weights else {}
    return pl.pallas_call(
        _ffn_kernel,
        out_shape=jax.ShapeDtypeStruct((M, D), out_dtype),
        grid=(grid_m,),
        in_specs=[
            pl.BlockSpec((tm, D), lambda i: (i, 0)),          # x rows (pipelined)
            pl.BlockSpec((D, H), lambda i: (0, 0), **wkw),    # W1 (resident)
            pl.BlockSpec((1, H), lambda i: (0, 0), **wkw),    # b1
            pl.BlockSpec((H, D), lambda i: (0, 0), **wkw),    # W2 (resident)
            pl.BlockSpec((1, D), lambda i: (0, 0), **wkw),    # b2
        ],
        out_specs=pl.BlockSpec((tm, D), lambda i: (i, 0)),
        compiler_params=pltpu.CompilerParams(
            dimension_semantics=("parallel",),
            vmem_limit_bytes=int(vmem_limit)),
    )


def feedforward_pallas(x, w1, b1, w2, b2, *, block_rows=None):
    """x: (B, N, D).  Torch Linear layout: w1 (H, D), b1 (H,), w2 (D, H), b2 (D,)."""
    B, N, D = x.shape
    H = w1.shape[0]
    M = B * N

    vmem_budget = _vmem_budget_bytes()
    if block_rows is None:
        # Big-VMEM chips (v5e/v6e, 128 MiB): 512-row tiles amortize per-step
        # overhead.  v7x (64 MiB): stay at 256.
        block_rows = 512 if vmem_budget >= (96 << 20) else 256

    # Row tile: multiple of 16 (full bf16 sublane packing); for small-but-not-
    # tiny M, shrink so the parallel row axis has >= 2 steps (v7x has 2 TCs).
    tm = min(block_rows, _round_up(M, 16))
    if pl.cdiv(M, tm) == 1 and M > 32:
        tm = max(16, _round_up(pl.cdiv(M, 2), 16))

    # Fold batch+sequence into rows.  No explicit padding: the grid is
    # cdiv(M, tm) and Pallas masks the ragged last block (rows are independent,
    # so garbage padding rows never contaminate valid outputs).
    x2 = x.reshape(M, D)

    # Weights: matmul layout + bf16 once on the host side (halves weight DMA,
    # full MXU bf16 rate); biases stay f32 for the element-wise path.
    w1_t = jnp.transpose(w1).astype(jnp.bfloat16)          # (D, H)
    w2_t = jnp.transpose(w2).astype(jnp.bfloat16)          # (H, D)
    b1_2d = b1.reshape(1, H).astype(jnp.float32)
    b2_2d = b2.reshape(1, D).astype(jnp.float32)
    args = (x2, w1_t, b1_2d, w2_t, b2_2d)

    try:
        out = _build_ffn_call(M, D, H, tm, x.dtype, vmem_budget,
                              single_buffer_weights=True)(*args)
    except Exception:
        # Fallback for JAX versions that reject pl.Buffered(1) specs.
        out = _build_ffn_call(M, D, H, tm, x.dtype, vmem_budget,
                              single_buffer_weights=False)(*args)

    return out.reshape(B, N, D)


# ----------------------------------------------------------------------------
# References
# ----------------------------------------------------------------------------
def feedforward_reference(x, w1, b1, w2, b2):
    """Pure-JAX f32 reference matching the PyTorch forward (eval mode, exact erf)."""
    h = x @ w1.T + b1
    h = jax.nn.gelu(h, approximate=False)
    return h @ w2.T + b2


def feedforward_reference_kernel_plan(x, w1, b1, w2, b2):
    """Reference mimicking the kernel's precision plan (bf16 MXU, f32 tanh-GELU)."""
    B, N, D = x.shape
    h = jnp.dot(x.reshape(-1, D).astype(jnp.bfloat16),
                jnp.transpose(w1).astype(jnp.bfloat16),
                preferred_element_type=jnp.float32) + b1.astype(jnp.float32)
    h = _gelu_tanh_f32(h)
    y = jnp.dot(h.astype(jnp.bfloat16),
                jnp.transpose(w2).astype(jnp.bfloat16),
                preferred_element_type=jnp.float32) + b2.astype(jnp.float32)
    return y.reshape(B, N, -1).astype(x.dtype)


if __name__ == "__main__":
    # Small shapes consistent with the module: x (B, N, dim), hidden_dim MLP.
    B, N, dim, hidden_dim = 2, 8, 32, 64

    key = jax.random.PRNGKey(0)
    kx, k1, k2, k3, k4 = jax.random.split(key, 5)

    x = jax.random.normal(kx, (B, N, dim), dtype=jnp.float32)
    # torch.nn.Linear layout: (out_features, in_features)
    w1 = jax.random.normal(k1, (hidden_dim, dim), dtype=jnp.float32) * 0.05
    b1 = jax.random.normal(k2, (hidden_dim,), dtype=jnp.float32) * 0.05
    w2 = jax.random.normal(k3, (dim, hidden_dim), dtype=jnp.float32) * 0.05
    b2 = jax.random.normal(k4, (dim,), dtype=jnp.float32) * 0.05

    y = feedforward_pallas(x, w1, b1, w2, b2)
    y = jax.block_until_ready(y)

    # Tight-ish check against a reference with the same precision plan
    # (bf16 MXU operands, f32 tanh-GELU).
    y_ref_plan = feedforward_reference_kernel_plan(x, w1, b1, w2, b2)
    assert jnp.allclose(y, y_ref_plan, atol=1e-3, rtol=1e-3), \
        "mismatch vs kernel-precision reference"

    # Looser check against the exact f32 PyTorch-semantics reference
    # (difference dominated by bf16 MXU operands + tanh-approx GELU).
    y_ref = feedforward_reference(x, w1, b1, w2, b2)
    assert jnp.allclose(y, y_ref, atol=2e-2, rtol=2e-2), \
        "mismatch vs f32 PyTorch-semantics reference"

    print("KERNEL_OK")
</pallas_src>

<mosaic_0001>
module attributes {stable_mosaic.version = 11 : i64} {
  func.func @_ffn_kernel(%arg0: i32, %arg1: memref<16x32xf32, #tpu.memory_space<vmem>>, %arg2: memref<32x64xbf16, #tpu.memory_space<vmem>>, %arg3: memref<1x64xf32, #tpu.memory_space<vmem>>, %arg4: memref<64x32xbf16, #tpu.memory_space<vmem>>, %arg5: memref<1x32xf32, #tpu.memory_space<vmem>>, %arg6: memref<16x32xf32, #tpu.memory_space<vmem>>) attributes {dimension_semantics = [#tpu.dimension_semantics<parallel>], iteration_bounds = array<i64: 1>, scalar_prefetch = 0 : i64, scratch_operands = 0 : i64, tpu.core_type = #tpu.core_type<tc>, window_params = [{transform_indices = @transform_0, window_bounds = array<i64: 16, 32>}, {pipeline_mode = #tpu.pipeline_mode<synchronous>, transform_indices = @transform_1, window_bounds = array<i64: 32, 64>}, {pipeline_mode = #tpu.pipeline_mode<synchronous>, transform_indices = @transform_2, window_bounds = array<i64: 1, 64>}, {pipeline_mode = #tpu.pipeline_mode<synchronous>, transform_indices = @transform_3, window_bounds = array<i64: 64, 32>}, {pipeline_mode = #tpu.pipeline_mode<synchronous>, transform_indices = @transform_4, window_bounds = array<i64: 1, 32>}, {transform_indices = @transform_5, window_bounds = array<i64: 16, 32>}]} {
    %c0 = arith.constant 0 : index
    %c0_0 = arith.constant 0 : index
    %0 = vector.load %arg1[%c0, %c0_0] : memref<16x32xf32, #tpu.memory_space<vmem>>, vector<16x32xf32>
    %1 = arith.truncf %0 : vector<16x32xf32> to vector<16x32xbf16>
    %c0_1 = arith.constant 0 : index
    %c0_2 = arith.constant 0 : index
    %2 = vector.load %arg2[%c0_1, %c0_2] : memref<32x64xbf16, #tpu.memory_space<vmem>>, vector<32x64xbf16>
    %cst = arith.constant dense<0.000000e+00> : vector<16x64xf32>
    %3 = tpu.matmul %1, %2, %cst {dimension_numbers = #tpu.dot_dimension_numbers<[1], [0], [0], [1], [0, 0, 1, 1], [], []>} : vector<16x32xbf16>, vector<32x64xbf16>, vector<16x64xf32> -> vector<16x64xf32>
    %c0_3 = arith.constant 0 : index
    %c0_4 = arith.constant 0 : index
    %4 = vector.load %arg3[%c0_3, %c0_4] : memref<1x64xf32, #tpu.memory_space<vmem>>, vector<1x64xf32>
    %5 = vector.broadcast %4 : vector<1x64xf32> to vector<16x64xf32>
    %6 = arith.addf %3, %5 : vector<16x64xf32>
    %cst_5 = arith.constant 5.000000e-01 : f32
    %7 = vector.broadcast %cst_5 : f32 to vector<16x64xf32>
    %8 = arith.mulf %7, %6 : vector<16x64xf32>
    %cst_6 = arith.constant 4.471500e-02 : f32
    %9 = vector.broadcast %cst_6 : f32 to vector<16x64xf32>
    %10 = arith.mulf %9, %6 : vector<16x64xf32>
    %11 = arith.mulf %10, %6 : vector<16x64xf32>
    %12 = arith.mulf %11, %6 : vector<16x64xf32>
    %13 = arith.addf %6, %12 : vector<16x64xf32>
    %cst_7 = arith.constant 0.797884583 : f32
    %14 = vector.broadcast %cst_7 : f32 to vector<16x64xf32>
    %15 = arith.mulf %14, %13 : vector<16x64xf32>
    %16 = math.tanh %15 : vector<16x64xf32>
    %cst_8 = arith.constant 1.000000e+00 : f32
    %17 = vector.broadcast %cst_8 : f32 to vector<16x64xf32>
    %18 = arith.addf %17, %16 : vector<16x64xf32>
    %19 = arith.mulf %8, %18 : vector<16x64xf32>
    %20 = arith.truncf %19 : vector<16x64xf32> to vector<16x64xbf16>
    %c0_9 = arith.constant 0 : index
    %c0_10 = arith.constant 0 : index
    %21 = vector.load %arg4[%c0_9, %c0_10] : memref<64x32xbf16, #tpu.memory_space<vmem>>, vector<64x32xbf16>
    %cst_11 = arith.constant dense<0.000000e+00> : vector<16x32xf32>
    %22 = tpu.matmul %20, %21, %cst_11 {dimension_numbers = #tpu.dot_dimension_numbers<[1], [0], [0], [1], [0, 0, 1, 1], [], []>} : vector<16x64xbf16>, vector<64x32xbf16>, vector<16x32xf32> -> vector<16x32xf32>
    %c0_12 = arith.constant 0 : index
    %c0_13 = arith.constant 0 : index
    %23 = vector.load %arg5[%c0_12, %c0_13] : memref<1x32xf32, #tpu.memory_space<vmem>>, vector<1x32xf32>
    %24 = vector.broadcast %23 : vector<1x32xf32> to vector<16x32xf32>
    %25 = arith.addf %22, %24 : vector<16x32xf32>
    %c0_14 = arith.constant 0 : index
    %c0_15 = arith.constant 0 : index
    %26 = vector.load %arg6[%c0_14, %c0_15] : memref<16x32xf32, #tpu.memory_space<vmem>>, vector<16x32xf32>
    tpu.vector_store %arg6[%c0_14, %c0_15], %25 {strides = array<i32>} : memref<16x32xf32, #tpu.memory_space<vmem>>, vector<16x32xf32>,
    return
  }
  func.func @transform_0(%arg0: i32) -> (i32, i32) {
    %c0_i32 = arith.constant 0 : i32
    %c0_i32_0 = arith.constant 0 : i32
    return %arg0, %c0_i32 : i32, i32
  }
  func.func @transform_1(%arg0: i32) -> (i32, i32) {
    %c0_i32 = arith.constant 0 : i32
    %c0_i32_0 = arith.constant 0 : i32
    %c0_i32_1 = arith.constant 0 : i32
    return %c0_i32, %c0_i32_0 : i32, i32
  }
  func.func @transform_2(%arg0: i32) -> (i32, i32) {
    %c0_i32 = arith.constant 0 : i32
    %c0_i32_0 = arith.constant 0 : i32
    %c0_i32_1 = arith.constant 0 : i32
    return %c0_i32, %c0_i32_0 : i32, i32
  }
  func.func @transform_3(%arg0: i32) -> (i32, i32) {
    %c0_i32 = arith.constant 0 : i32
    %c0_i32_0 = arith.constant 0 : i32
    %c0_i32_1 = arith.constant 0 : i32
    return %c0_i32, %c0_i32_0 : i32, i32
  }
  func.func @transform_4(%arg0: i32) -> (i32, i32) {
    %c0_i32 = arith.constant 0 : i32
    %c0_i32_0 = arith.constant 0 : i32
    %c0_i32_1 = arith.constant 0 : i32
    return %c0_i32, %c0_i32_0 : i32, i32
  }
  func.func @transform_5(%arg0: i32) -> (i32, i32) {
    %c0_i32 = arith.constant 0 : i32
    %c0_i32_0 = arith.constant 0 : i32
    return %arg0, %c0_i32 : i32, i32
  }
}

module attributes {stable_mosaic.version = 11 : i64} {
  func.func @_ffn_kernel(%arg0: i32, %arg1: memref<16x32xf32, #tpu.memory_space<vmem>>, %arg2: memref<32x64xbf16, #tpu.memory_space<vmem>>, %arg3: memref<1x64xf32, #tpu.memory_space<vmem>>, %arg4: memref<64x32xbf16, #tpu.memory_space<vmem>>, %arg5: memref<1x32xf32, #tpu.memory_space<vmem>>, %arg6: memref<16x32xf32, #tpu.memory_space<vmem>>) attributes {dimension_semantics = [#tpu.dimension_semantics<parallel>], iteration_bounds = array<i64: 1>, scalar_prefetch = 0 : i64, scratch_operands = 0 : i64, tpu.core_type = #tpu.core_type<tc>, window_params = [{transform_indices = @transform_0, window_bounds = array<i64: 16, 32>}, {pipeline_mode = #tpu.pipeline_mode<synchronous>, transform_indices = @transform_1, window_bounds = array<i64: 32, 64>}, {pipeline_mode = #tpu.pipeline_mode<synchronous>, transform_indices = @transform_2, window_bounds = array<i64: 1, 64>}, {pipeline_mode = #tpu.pipeline_mode<synchronous>, transform_indices = @transform_3, window_bounds = array<i64: 64, 32>}, {pipeline_mode = #tpu.pipeline_mode<synchronous>, transform_indices = @transform_4, window_bounds = array<i64: 1, 32>}, {transform_indices = @transform_5, window_bounds = array<i64: 16, 32>}]} {
    %c0 = arith.constant 0 : index
    %c0_0 = arith.constant 0 : index
    %0 = vector.load %arg1[%c0, %c0_0] : memref<16x32xf32, #tpu.memory_space<vmem>>, vector<16x32xf32>
    %1 = arith.truncf %0 : vector<16x32xf32> to vector<16x32xbf16>
    %c0_1 = arith.constant 0 : index
    %c0_2 = arith.constant 0 : index
    %2 = vector.load %arg2[%c0_1, %c0_2] : memref<32x64xbf16, #tpu.memory_space<vmem>>, vector<32x64xbf16>
    %cst = arith.constant dense<0.000000e+00> : vector<16x64xf32>
    %3 = tpu.matmul %1, %2, %cst {dimension_numbers = #tpu.dot_dimension_numbers<[1], [0], [0], [1], [0, 0, 1, 1], [], []>} : vector<16x32xbf16>, vector<32x64xbf16>, vector<16x64xf32> -> vector<16x64xf32>
    %c0_3 = arith.constant 0 : index
    %c0_4 = arith.constant 0 : index
    %4 = vector.load %arg3[%c0_3, %c0_4] : memref<1x64xf32, #tpu.memory_space<vmem>>, vector<1x64xf32>
    %5 = vector.broadcast %4 : vector<1x64xf32> to vector<16x64xf32>
    %6 = arith.addf %3, %5 : vector<16x64xf32>
    %cst_5 = arith.constant 5.000000e-01 : f32
    %7 = vector.broadcast %cst_5 : f32 to vector<16x64xf32>
    %8 = arith.mulf %7, %6 : vector<16x64xf32>
    %cst_6 = arith.constant 4.471500e-02 : f32
    %9 = vector.broadcast %cst_6 : f32 to vector<16x64xf32>
    %10 = arith.mulf %9, %6 : vector<16x64xf32>
    %11 = arith.mulf %10, %6 : vector<16x64xf32>
    %12 = arith.mulf %11, %6 : vector<16x64xf32>
    %13 = arith.addf %6, %12 : vector<16x64xf32>
    %cst_7 = arith.constant 0.797884583 : f32
    %14 = vector.broadcast %cst_7 : f32 to vector<16x64xf32>
    %15 = arith.mulf %14, %13 : vector<16x64xf32>
    %16 = math.tanh %15 : vector<16x64xf32>
    %cst_8 = arith.constant 1.000000e+00 : f32
    %17 = vector.broadcast %cst_8 : f32 to vector<16x64xf32>
    %18 = arith.addf %17, %16 : vector<16x64xf32>
    %19 = arith.mulf %8, %18 : vector<16x64xf32>
    %20 = arith.truncf %19 : vector<16x64xf32> to vector<16x64xbf16>
    %c0_9 = arith.constant 0 : index
    %c0_10 = arith.constant 0 : index
    %21 = vector.load %arg4[%c0_9, %c0_10] : memref<64x32xbf16, #tpu.memory_space<vmem>>, vector<64x32xbf16>
    %cst_11 = arith.constant dense<0.000000e+00> : vector<16x32xf32>
    %22 = tpu.matmul %20, %21, %cst_11 {dimension_numbers = #tpu.dot_dimension_numbers<[1], [0], [0], [1], [0, 0, 1, 1], [], []>} : vector<16x64xbf16>, vector<64x32xbf16>, vector<16x32xf32> -> vector<16x32xf32>
    %c0_12 = arith.constant 0 : index
    %c0_13 = arith.constant 0 : index
    %23 = vector.load %arg5[%c0_12, %c0_13] : memref<1x32xf32, #tpu.memory_space<vmem>>, vector<1x32xf32>
    %24 = vector.broadcast %23 : vector<1x32xf32> to vector<16x32xf32>
    %25 = arith.addf %22, %24 : vector<16x32xf32>
    %c0_14 = arith.constant 0 : index
    %c0_15 = arith.constant 0 : index
    %26 = vector.load %arg6[%c0_14, %c0_15] : memref<16x32xf32, #tpu.memory_space<vmem>>, vector<16x32xf32>
    tpu.vector_store %arg6[%c0_14, %c0_15], %25 {strides = array<i32>} : memref<16x32xf32, #tpu.memory_space<vmem>>, vector<16x32xf32>,
    return
  }
  func.func @transform_0(%arg0: i32) -> (i32, i32) {
    %c0_i32 = arith.constant 0 : i32
    %c0_i32_0 = arith.constant 0 : i32
    return %arg0, %c0_i32 : i32, i32
  }
  func.func @transform_1(%arg0: i32) -> (i32, i32) {
    %c0_i32 = arith.constant 0 : i32
    %c0_i32_0 = arith.constant 0 : i32
    %c0_i32_1 = arith.constant 0 : i32
    return %c0_i32, %c0_i32_0 : i32, i32
  }
  func.func @transform_2(%arg0: i32) -> (i32, i32) {
    %c0_i32 = arith.constant 0 : i32
    %c0_i32_0 = arith.constant 0 : i32
    %c0_i32_1 = arith.constant 0 : i32
    return %c0_i32, %c0_i32_0 : i32, i32
  }
  func.func @transform_3(%arg0: i32) -> (i32, i32) {
    %c0_i32 = arith.constant 0 : i32
    %c0_i32_0 = arith.constant 0 : i32
    %c0_i32_1 = arith.constant 0 : i32
    return %c0_i32, %c0_i32_0 : i32, i32
  }
  func.func @transform_4(%arg0: i32) -> (i32, i32) {
    %c0_i32 = arith.constant 0 : i32
    %c0_i32_0 = arith.constant 0 : i32
    %c0_i32_1 = arith.constant 0 : i32
    return %c0_i32, %c0_i32_0 : i32, i32
  }
  func.func @transform_5(%arg0: i32) -> (i32, i32) {
    %c0_i32 = arith.constant 0 : i32
    %c0_i32_0 = arith.constant 0 : i32
    return %arg0, %c0_i32 : i32, i32
  }
}

</mosaic_0001>

<bundles_post_ra>
// kernel: tpu_custom_call.1
= control target key start
LH: loop header
LB: loop body
LE: loop exit
PB: predicated region body
PF: predicated region fallthrough
CT: control target
= control target key end

     0   :  { %s292_s0 = inlined_call_operand.vmem [shape: f32[16,32], index: 0, kind: input, shape index: {}]   ;;  %s293_s1 = inlined_call_operand.vmem [shape: bf16[32,64], index: 1, kind: input, shape index: {}]   ;;  %s294_s2 = inlined_call_operand.vmem [shape: f32[1,64], index: 2, kind: input, shape index: {}]   ;;  %s295_s3 = inlined_call_operand.vmem [shape: bf16[64,32], index: 3, kind: input, shape index: {}]   ;;  %s296_s4 = inlined_call_operand.vmem [shape: f32[1,32], index: 4, kind: input, shape index: {}]   ;;  %s297_s5 = inlined_call_operand.hbm [shape: f32[16,32], index: 5, kind: output, shape index: {}]  }
   0x1   :  { %v183_v0 = vld [vmem:[%s293_s1 + $0x8] sm:$0xff]  ;;  %v182_v1 = vld [vmem:[%s293_s1] sm:$0xff] }
   0x2   :  { %v22_v2 = vld [vmem:[%s292_s0] sm:$0xff]  ;;  %55 = vmatpush.bf16.msra.mxu0 %v183_v0  ;;  %v23_v3 = vld [vmem:[%s292_s0 + $0x8] sm:$0xff] }
   0x3   :  { %10 = vsyncpa [#allocation3], 0  ;;  %v24_v4 = vpack.c.bf16 %v23_v3, %v22_v2  ;;  %vm45_vm0 = vcmask 261120   ;;  %v187_v5 = vld [vmem:[%s295_s3 + $0x18] sm:$0xff]  ;;  %v186_v6 = vld [vmem:[%s295_s3 + $0x10] sm:$0xff]  ;;  %vm118_vm1 = vcmask 523264  }
   0x4   :  { %126 = vmatpush.bf16.msra.mxu1 %v187_v5  ;;  %v185_v7 = vld [vmem:[%s295_s3 + $0x8] sm:$0xff]  ;;  %v184_v8 = vld [vmem:[%s295_s3] sm:$0xff]  ;;  %s223_s9 = smov [#allocation2]   ;;  %s144_s13 = sshll.u32 %s297_s5, 4  ;;  %s145_s13 = int_to_ptr.hbm [resolvable:$true] %s144_s13 }
   0x5   :  { %v191_v9 = vld [vmem:[%s294_s2] ss:$0 sm:$0xff]  ;;  %s142_s10 = sshll.u32 %s223_s9, 4  ;;  %s224_s14 = smov 128   ;;  %s143_s10 = int_to_ptr.vmem [resolvable:$true] %s142_s10 }
   0x6   :  { %56 = vmatpush.bf16.msra.mxu0 %v182_v1  ;;  %v192_v33 = vld [vmem:[%s296_s4] ss:$0 sm:$0xff]  ;;  %s225_s15 = smov 8  }
   0x8   :  { %127 = vmatpush.bf16.msra.mxu1 %v186_v6 }
   0x9   :  { %164 = vmatmul.msk.bf16.vlgmr.msra.gmra.mxu0 %vm45_vm0, %v24_v4 }
   0xc   :  { %128 = vmatpush.bf16.msra.mxu1 %v185_v7 }
  0x10   :  { %129 = vmatpush.bf16.msra.mxu1 %v184_v8 }
  0x86   :  { %v58_v10 = vpop.f32.mrf.mxu0 }
  0x87   :  { %v59_v11 = vadd.f32 %v191_v9, %v58_v10 }
  0x89   :  { %v65_v12 = vmul.f32 0.044715, %v59_v11  ;;  %v63_v27 = vmul.f32 0.5, %v59_v11 }
  0x8b   :  { %v67_v13 = vmul.f32 %v65_v12, %v59_v11 }
  0x8d   :  { %v69_v14 = vmul.f32 %v67_v13, %v59_v11 }
  0x8e   :  { %v60_v15 = vpop.f32.mrf.mxu0 }
  0x8f   :  { %v61_v16 = vadd.f32 %v191_v9, %v60_v15  ;;  %v71_v17 = vadd.f32 %v69_v14, %v59_v11 }
  0x91   :  { %v66_v18 = vmul.f32 0.044715, %v61_v16  ;;  %v73_v20 = vmul.f32 0.7978846, %v71_v17  ;;  %v64_v28 = vmul.f32 0.5, %v61_v16 }
  0x93   :  { %v68_v19 = vmul.f32 %v66_v18, %v61_v16  ;;  %193 = vtanh.f32 %v73_v20 }
  0x95   :  { %v70_v21 = vmul.f32 %v68_v19, %v61_v16 }
  0x97   :  { %v72_v22 = vadd.f32 %v70_v21, %v61_v16 }
  0x99   :  { %v74_v23 = vmul.f32 0.7978846, %v72_v22  ;;  %v194_v24 = vpop.eup %193 }
  0x9a   :  { %v77_v25 = vadd.f32 1.0, %v194_v24 }
  0x9b   :  { %195 = vtanh.f32 %v74_v23 }
  0x9c   :  { %v79_v30 = vmul.f32 %v77_v25, %v63_v27 }
  0xa1   :  { %v196_v26 = vpop.eup %195 }
  0xa2   :  { %v78_v29 = vadd.f32 1.0, %v196_v26 }
  0xa4   :  { %v80_v31 = vmul.f32 %v78_v29, %v64_v28 }
  0xa6   :  { %v81_v32 = vpack.c.bf16 %v80_v31, %v79_v30 }
  0xa8   :  { %181 = vmatmul.msk.bf16.vlgmr.msra.gmra.mxu1 %vm118_vm1, %v81_v32 }
 0x125   :  { %v131_v34 = vpop.f32.mrf.mxu1 }
 0x126   :  { %v132_v35 = vadd.f32 %v192_v33, %v131_v34 }
 0x128   :  { %136 = vst.msk [vmem:[#allocation2] sm:$0xff] %vm45_vm0, %v132_v35 }
 0x12d   :  { %v133_v36 = vpop.f32.mrf.mxu1 }
 0x12e   :  { %v134_v37 = vadd.f32 %v192_v33, %v133_v36 }
 0x130   :  { %137 = vst.msk [vmem:[#allocation2 + $0x8] sm:$0xff] %vm45_vm0, %v134_v37 }
 0x131   :  { %150 = dma.vmem_to_hbm [thread:$0]  %s143_s10, 256, %s145_s13, [#allocation3], %s224_s14, %s224_s14, %s225_s15  }
 0x132   :  { %221 = dma.done.wait [#allocation3], 256  }
 0x133   :  { %222 = vsyncadd [#allocation3], 4294967040 }
 0x134   :  { %155 = vsyncpa [#allocation3], 1 }

// kernel: tpu_custom_call.1
= control target key start
LH: loop header
LB: loop body
LE: loop exit
PB: predicated region body
PF: predicated region fallthrough
CT: control target
= control target key end

     0   :  { %s292_s0 = inlined_call_operand.vmem [shape: f32[16,32], index: 0, kind: input, shape index: {}]   ;;  %s293_s1 = inlined_call_operand.vmem [shape: bf16[32,64], index: 1, kind: input, shape index: {}]   ;;  %s294_s2 = inlined_call_operand.vmem [shape: f32[1,64], index: 2, kind: input, shape index: {}]   ;;  %s295_s3 = inlined_call_operand.vmem [shape: bf16[64,32], index: 3, kind: input, shape index: {}]   ;;  %s296_s4 = inlined_call_operand.vmem [shape: f32[1,32], index: 4, kind: input, shape index: {}]   ;;  %s297_s5 = inlined_call_operand.hbm [shape: f32[16,32], index: 5, kind: output, shape index: {}]  }
   0x1   :  { %v183_v0 = vld [vmem:[%s293_s1 + $0x8] sm:$0xff]  ;;  %v182_v1 = vld [vmem:[%s293_s1] sm:$0xff] }
   0x2   :  { %v22_v2 = vld [vmem:[%s292_s0] sm:$0xff]  ;;  %55 = vmatpush.bf16.msra.mxu0 %v183_v0  ;;  %v23_v3 = vld [vmem:[%s292_s0 + $0x8] sm:$0xff] }
   0x3   :  { %10 = vsyncpa [#allocation3], 0  ;;  %v24_v4 = vpack.c.bf16 %v23_v3, %v22_v2  ;;  %vm45_vm0 = vcmask 261120   ;;  %v187_v5 = vld [vmem:[%s295_s3 + $0x18] sm:$0xff]  ;;  %v186_v6 = vld [vmem:[%s295_s3 + $0x10] sm:$0xff]  ;;  %vm118_vm1 = vcmask 523264  }
   0x4   :  { %126 = vmatpush.bf16.msra.mxu1 %v187_v5  ;;  %v185_v7 = vld [vmem:[%s295_s3 + $0x8] sm:$0xff]  ;;  %v184_v8 = vld [vmem:[%s295_s3] sm:$0xff]  ;;  %s223_s9 = smov [#allocation2]   ;;  %s144_s13 = sshll.u32 %s297_s5, 4  ;;  %s145_s13 = int_to_ptr.hbm [resolvable:$true] %s144_s13 }
   0x5   :  { %v191_v9 = vld [vmem:[%s294_s2] ss:$0 sm:$0xff]  ;;  %s142_s10 = sshll.u32 %s223_s9, 4  ;;  %s224_s14 = smov 128   ;;  %s143_s10 = int_to_ptr.vmem [resolvable:$true] %s142_s10 }
   0x6   :  { %56 = vmatpush.bf16.msra.mxu0 %v182_v1  ;;  %v192_v33 = vld [vmem:[%s296_s4] ss:$0 sm:$0xff]  ;;  %s225_s15 = smov 8  }
   0x8   :  { %127 = vmatpush.bf16.msra.mxu1 %v186_v6 }
   0x9   :  { %164 = vmatmul.msk.bf16.vlgmr.msra.gmra.mxu0 %vm45_vm0, %v24_v4 }
   0xc   :  { %128 = vmatpush.bf16.msra.mxu1 %v185_v7 }
  0x10   :  { %129 = vmatpush.bf16.msra.mxu1 %v184_v8 }
  0x86   :  { %v58_v10 = vpop.f32.mrf.mxu0 }
  0x87   :  { %v59_v11 = vadd.f32 %v191_v9, %v58_v10 }
  0x89   :  { %v65_v12 = vmul.f32 0.044715, %v59_v11  ;;  %v63_v27 = vmul.f32 0.5, %v59_v11 }
  0x8b   :  { %v67_v13 = vmul.f32 %v65_v12, %v59_v11 }
  0x8d   :  { %v69_v14 = vmul.f32 %v67_v13, %v59_v11 }
  0x8e   :  { %v60_v15 = vpop.f32.mrf.mxu0 }
  0x8f   :  { %v61_v16 = vadd.f32 %v191_v9, %v60_v15  ;;  %v71_v17 = vadd.f32 %v69_v14, %v59_v11 }
  0x91   :  { %v66_v18 = vmul.f32 0.044715, %v61_v16  ;;  %v73_v20 = vmul.f32 0.7978846, %v71_v17  ;;  %v64_v28 = vmul.f32 0.5, %v61_v16 }
  0x93   :  { %v68_v19 = vmul.f32 %v66_v18, %v61_v16  ;;  %193 = vtanh.f32 %v73_v20 }
  0x95   :  { %v70_v21 = vmul.f32 %v68_v19, %v61_v16 }
  0x97   :  { %v72_v22 = vadd.f32 %v70_v21, %v61_v16 }
  0x99   :  { %v74_v23 = vmul.f32 0.7978846, %v72_v22  ;;  %v194_v24 = vpop.eup %193 }
  0x9a   :  { %v77_v25 = vadd.f32 1.0, %v194_v24 }
  0x9b   :  { %195 = vtanh.f32 %v74_v23 }
  0x9c   :  { %v79_v30 = vmul.f32 %v77_v25, %v63_v27 }
  0xa1   :  { %v196_v26 = vpop.eup %195 }
  0xa2   :  { %v78_v29 = vadd.f32 1.0, %v196_v26 }
  0xa4   :  { %v80_v31 = vmul.f32 %v78_v29, %v64_v28 }
  0xa6   :  { %v81_v32 = vpack.c.bf16 %v80_v31, %v79_v30 }
  0xa8   :  { %181 = vmatmul.msk.bf16.vlgmr.msra.gmra.mxu1 %vm118_vm1, %v81_v32 }
 0x125   :  { %v131_v34 = vpop.f32.mrf.mxu1 }
 0x126   :  { %v132_v35 = vadd.f32 %v192_v33, %v131_v34 }
 0x128   :  { %136 = vst.msk [vmem:[#allocation2] sm:$0xff] %vm45_vm0, %v132_v35 }
 0x12d   :  { %v133_v36 = vpop.f32.mrf.mxu1 }
 0x12e   :  { %v134_v37 = vadd.f32 %v192_v33, %v133_v36 }
 0x130   :  { %137 = vst.msk [vmem:[#allocation2 + $0x8] sm:$0xff] %vm45_vm0, %v134_v37 }
 0x131   :  { %150 = dma.vmem_to_hbm [thread:$0]  %s143_s10, 256, %s145_s13, [#allocation3], %s224_s14, %s224_s14, %s225_s15  }
 0x132   :  { %221 = dma.done.wait [#allocation3], 256  }
 0x133   :  { %222 = vsyncadd [#allocation3], 4294967040 }
 0x134   :  { %155 = vsyncpa [#allocation3], 1 }

</bundles_post_ra>
